<compile_context>
chip_gen: v6e
topology: v6e:2x2x1
jax: 0.10.0
libtpu: 0.0.40
codegen_flags: <defaults>
</compile_context>

<pallas_src>
import functools

import jax
import jax.numpy as jnp
from jax import lax
from jax.experimental import pallas as pl
from jax.experimental.pallas import tpu as pltpu


def _round_up(x, m):
    return (x + m - 1) // m * m


# ---------------------------------------------------------------------------
# Tile selection (shared by weight prep and the per-call wrappers)
# ---------------------------------------------------------------------------
def _k_tiles(K):
    Kp = _round_up(K, 128)
    if Kp <= 512:
        return Kp, Kp
    for cand in (512, 448, 384, 320, 256, 128):
        if Kp % cand == 0:
            return Kp, cand
    return Kp, 128


def _n_tiles(N):
    Np = _round_up(N, 128)
    tn = 256 if Np % 256 == 0 else 128
    return Np, tn


def _row_tiles(M):
    if M <= 256:
        Mp = _round_up(M, 32)
        return Mp, Mp
    return _round_up(M, 256), 256


# ---------------------------------------------------------------------------
# Pallas kernel 1: conv matmul (bf16 x bf16 -> fp32 acc -> bf16 out, no epilogue)
# ---------------------------------------------------------------------------
def _conv_mm_kernel(a_ref, w_ref, o_ref, acc_ref):
    @pl.when(pl.program_id(2) == 0)
    def _():
        acc_ref[...] = jnp.zeros_like(acc_ref)

    acc_ref[...] += jnp.dot(a_ref[...], w_ref[...],
                            preferred_element_type=jnp.float32)

    @pl.when(pl.program_id(2) == pl.num_programs(2) - 1)
    def _():
        o_ref[...] = acc_ref[...].astype(o_ref.dtype)


@functools.lru_cache(maxsize=None)
def _build_conv_mm(Mp, Kp, Np, tm, tn, tk):
    fn = pl.pallas_call(
        _conv_mm_kernel,
        out_shape=jax.ShapeDtypeStruct((Mp, Np), jnp.bfloat16),
        grid_spec=pltpu.PrefetchScalarGridSpec(
            num_scalar_prefetch=0,
            grid=(Mp // tm, Np // tn, Kp // tk),
            in_specs=[
                pl.BlockSpec((tm, tk), lambda i, j, k: (i, k)),
                pl.BlockSpec((tk, tn), lambda i, j, k: (k, j)),
            ],
            out_specs=pl.BlockSpec((tm, tn), lambda i, j, k: (i, j)),
            scratch_shapes=[pltpu.VMEM((tm, tn), jnp.float32)],
        ),
        compiler_params=pltpu.CompilerParams(
            dimension_semantics=("parallel", "parallel", "arbitrary")),
    )
    return jax.jit(fn)


# ---------------------------------------------------------------------------
# Pallas kernel 2: linear matmul with fused bias (fp32 output) for the fc heads
# ---------------------------------------------------------------------------
def _linear_kernel(a_ref, w_ref, b_ref, o_ref, acc_ref):
    @pl.when(pl.program_id(2) == 0)
    def _():
        acc_ref[...] = jnp.zeros_like(acc_ref)

    acc_ref[...] += jnp.dot(a_ref[...], w_ref[...],
                            preferred_element_type=jnp.float32)

    @pl.when(pl.program_id(2) == pl.num_programs(2) - 1)
    def _():
        o_ref[...] = (acc_ref[...] + b_ref[...]).astype(o_ref.dtype)


@functools.lru_cache(maxsize=None)
def _build_linear(Mp, Kp, Np, tm, tn, tk):
    fn = pl.pallas_call(
        _linear_kernel,
        out_shape=jax.ShapeDtypeStruct((Mp, Np), jnp.float32),
        grid_spec=pltpu.PrefetchScalarGridSpec(
            num_scalar_prefetch=0,
            grid=(Mp // tm, Np // tn, Kp // tk),
            in_specs=[
                pl.BlockSpec((tm, tk), lambda i, j, k: (i, k)),
                pl.BlockSpec((tk, tn), lambda i, j, k: (k, j)),
                pl.BlockSpec((1, tn), lambda i, j, k: (0, j)),
            ],
            out_specs=pl.BlockSpec((tm, tn), lambda i, j, k: (i, j)),
            scratch_shapes=[pltpu.VMEM((tm, tn), jnp.float32)],
        ),
        compiler_params=pltpu.CompilerParams(
            dimension_semantics=("parallel", "parallel", "arbitrary")),
    )
    return jax.jit(fn)


# ---------------------------------------------------------------------------
# Pallas kernels 3+4: training-mode BatchNorm split into
#   (a) stats pass: fp32 sum / sum-of-squares accumulated in a resident output
#   (b) normalize + gamma/beta + ReLU pass, "parallel" row tiles, bf16 output
# Padded rows/cols of y are exact zeros, so no masking is needed in the stats.
# ---------------------------------------------------------------------------
def _bn_stats_kernel(y_ref, stat_ref):
    @pl.when(pl.program_id(0) == 0)
    def _():
        stat_ref[...] = jnp.zeros_like(stat_ref)

    y = y_ref[...].astype(jnp.float32)
    stat_ref[0:1, :] += jnp.sum(y, axis=0, keepdims=True)
    stat_ref[1:2, :] += jnp.sum(y * y, axis=0, keepdims=True)


@functools.lru_cache(maxsize=None)
def _build_bn_stats(Mp, Np, tm):
    fn = pl.pallas_call(
        _bn_stats_kernel,
        out_shape=jax.ShapeDtypeStruct((8, Np), jnp.float32),
        grid_spec=pltpu.PrefetchScalarGridSpec(
            num_scalar_prefetch=0,
            grid=(Mp // tm,),
            in_specs=[pl.BlockSpec((tm, Np), lambda i: (i, 0))],
            out_specs=pl.BlockSpec((8, Np), lambda i: (0, 0)),
        ),
        compiler_params=pltpu.CompilerParams(
            dimension_semantics=("arbitrary",)),
    )
    return jax.jit(fn)


def _bn_norm_kernel(y_ref, stat_ref, g_ref, b_ref, o_ref, *, m_total, eps):
    y = y_ref[...].astype(jnp.float32)
    inv_m = 1.0 / float(m_total)
    mean = stat_ref[0:1, :] * inv_m
    var = stat_ref[1:2, :] * inv_m - mean * mean   # biased var (PyTorch training BN)
    inv = g_ref[...] * lax.rsqrt(var + eps)
    out = (y - mean) * inv + b_ref[...]
    out = jnp.maximum(out, 0.0)                    # fused ReLU (BasicConv2d)
    o_ref[...] = out.astype(o_ref.dtype)


@functools.lru_cache(maxsize=None)
def _build_bn_norm(Mp, Np, tm, m_total):
    fn = pl.pallas_call(
        functools.partial(_bn_norm_kernel, m_total=m_total, eps=1e-3),
        out_shape=jax.ShapeDtypeStruct((Mp, Np), jnp.bfloat16),
        grid_spec=pltpu.PrefetchScalarGridSpec(
            num_scalar_prefetch=0,
            grid=(Mp // tm,),
            in_specs=[
                pl.BlockSpec((tm, Np), lambda i: (i, 0)),
                pl.BlockSpec((8, Np), lambda i: (0, 0)),
                pl.BlockSpec((1, Np), lambda i: (0, 0)),
                pl.BlockSpec((1, Np), lambda i: (0, 0)),
            ],
            out_specs=pl.BlockSpec((tm, Np), lambda i: (i, 0)),
        ),
        compiler_params=pltpu.CompilerParams(
            dimension_semantics=("parallel",)),
    )
    return jax.jit(fn)


# ---------------------------------------------------------------------------
# Conv / pooling / linear glue built on the Pallas kernels
# ---------------------------------------------------------------------------
def _im2col(x, kh, kw, sh, sw, ph, pw):
    # x: (N, H, W, C) bf16 -> patches (N*oh*ow, kh*kw*C), feature order (kh, kw, C)
    # TODO(synk): patch extraction is still materialized in HBM via JAX glue; a
    # halo'd-BlockSpec in-kernel gather would remove the kh*kw read amplification.
    x = jnp.pad(x, ((0, 0), (ph, ph), (pw, pw), (0, 0)))
    n, H, W, c = x.shape
    oh = (H - kh) // sh + 1
    ow = (W - kw) // sw + 1
    cols = []
    for i in range(kh):
        for j in range(kw):
            cols.append(x[:, i:i + sh * (oh - 1) + 1:sh,
                          j:j + sw * (ow - 1) + 1:sw, :])
    patches = jnp.concatenate(cols, axis=-1)
    return patches.reshape(n * oh * ow, kh * kw * c), oh, ow


def basic_conv2d(x, pr, stride=1, padding=0):
    """BasicConv2d: Conv2d(bias=False) + BatchNorm2d(eps=1e-3, training) + ReLU."""
    n, H, W, _ = x.shape
    kh, kw, cin, N, K, Kp, Np, tk, tn = pr["meta"]
    sh, sw = (stride, stride) if isinstance(stride, int) else stride
    ph, pw = (padding, padding) if isinstance(padding, int) else padding

    if kh == 1 and kw == 1 and sh == 1 and sw == 1 and ph == 0 and pw == 0:
        oh, ow = H, W
        patches = x.reshape(n * H * W, cin)        # 1x1 conv: no im2col needed
    else:
        patches, oh, ow = _im2col(x, kh, kw, sh, sw, ph, pw)

    M = patches.shape[0]
    Mp, tm = _row_tiles(M)
    if Mp != M or Kp != K:
        patches = jnp.pad(patches, ((0, Mp - M), (0, Kp - K)))

    y_pad = _build_conv_mm(Mp, Kp, Np, tm, tn, tk)(patches, pr["wm"])   # (Mp,Np) bf16
    stats = _build_bn_stats(Mp, Np, tm)(y_pad)                          # (8,Np) fp32
    z_pad = _build_bn_norm(Mp, Np, tm, M)(y_pad, stats,
                                          pr["gamma"], pr["beta"])      # (Mp,Np) bf16
    return z_pad[:M, :N].reshape(n, oh, ow, N)


# TODO(synk): pooling (max/avg/adaptive) uses lax.reduce_window / mean glue rather
# than a dedicated Pallas kernel; the matmul / BN hot path is in Pallas.
def max_pool(x, k, s):
    return lax.reduce_window(x, jnp.array(-jnp.inf, x.dtype), lax.max,
                             (1, k, k, 1), (1, s, s, 1), "VALID")


def avg_pool(x, k, s, pad=0):
    xf = x.astype(jnp.float32)
    summed = lax.reduce_window(xf, 0.0, lax.add, (1, k, k, 1), (1, s, s, 1),
                               [(0, 0), (pad, pad), (pad, pad), (0, 0)])
    return (summed / float(k * k)).astype(x.dtype)   # count_include_pad=True


def linear(x, p):
    w, b = p["w"], p["b"]                 # w: (out, in) PyTorch layout (tiny heads)
    M, K = x.shape
    N = w.shape[0]
    Kp, tk = _k_tiles(K)
    Np, tn = _n_tiles(N)
    Mp, tm = _row_tiles(M)
    a = jnp.pad(x.astype(jnp.bfloat16), ((0, Mp - M), (0, Kp - K)))
    wm = jnp.pad(w.T.astype(jnp.bfloat16), ((0, Kp - K), (0, Np - N)))
    bp = jnp.pad(b.astype(jnp.float32).reshape(1, N), ((0, 0), (0, Np - N)))
    out = _build_linear(Mp, Kp, Np, tm, tn, tk)(a, wm, bp)
    return out[:M, :N]


# ---------------------------------------------------------------------------
# Inception blocks (exact torchvision topology / concat order)
# ---------------------------------------------------------------------------
def inception_a(x, p):
    b1 = basic_conv2d(x, p["branch1x1"])
    b5 = basic_conv2d(x, p["branch5x5_1"])
    b5 = basic_conv2d(b5, p["branch5x5_2"], padding=2)
    bd = basic_conv2d(x, p["branch3x3dbl_1"])
    bd = basic_conv2d(bd, p["branch3x3dbl_2"], padding=1)
    bd = basic_conv2d(bd, p["branch3x3dbl_3"], padding=1)
    bp = avg_pool(x, 3, 1, pad=1)
    bp = basic_conv2d(bp, p["branch_pool"])
    return jnp.concatenate([b1, b5, bd, bp], axis=-1)


def inception_b(x, p):
    b3 = basic_conv2d(x, p["branch3x3"], stride=2)
    bd = basic_conv2d(x, p["branch3x3dbl_1"])
    bd = basic_conv2d(bd, p["branch3x3dbl_2"], padding=1)
    bd = basic_conv2d(bd, p["branch3x3dbl_3"], stride=2)
    bp = max_pool(x, 3, 2)
    return jnp.concatenate([b3, bd, bp], axis=-1)


def inception_c(x, p):
    b1 = basic_conv2d(x, p["branch1x1"])
    b7 = basic_conv2d(x, p["branch7x7_1"])
    b7 = basic_conv2d(b7, p["branch7x7_2"], padding=(0, 3))
    b7 = basic_conv2d(b7, p["branch7x7_3"], padding=(3, 0))
    bd = basic_conv2d(x, p["branch7x7dbl_1"])
    bd = basic_conv2d(bd, p["branch7x7dbl_2"], padding=(3, 0))
    bd = basic_conv2d(bd, p["branch7x7dbl_3"], padding=(0, 3))
    bd = basic_conv2d(bd, p["branch7x7dbl_4"], padding=(3, 0))
    bd = basic_conv2d(bd, p["branch7x7dbl_5"], padding=(0, 3))
    bp = avg_pool(x, 3, 1, pad=1)
    bp = basic_conv2d(bp, p["branch_pool"])
    return jnp.concatenate([b1, b7, bd, bp], axis=-1)


def inception_d(x, p):
    b3 = basic_conv2d(x, p["branch3x3_1"])
    b3 = basic_conv2d(b3, p["branch3x3_2"], stride=2)
    b7 = basic_conv2d(x, p["branch7x7x3_1"])
    b7 = basic_conv2d(b7, p["branch7x7x3_2"], padding=(0, 3))
    b7 = basic_conv2d(b7, p["branch7x7x3_3"], padding=(3, 0))
    b7 = basic_conv2d(b7, p["branch7x7x3_4"], stride=2)
    bp = max_pool(x, 3, 2)
    return jnp.concatenate([b3, b7, bp], axis=-1)


def inception_e(x, p):
    b1 = basic_conv2d(x, p["branch1x1"])
    b3 = basic_conv2d(x, p["branch3x3_1"])
    b3 = jnp.concatenate([basic_conv2d(b3, p["branch3x3_2a"], padding=(0, 1)),
                          basic_conv2d(b3, p["branch3x3_2b"], padding=(1, 0))],
                         axis=-1)
    bd = basic_conv2d(x, p["branch3x3dbl_1"])
    bd = basic_conv2d(bd, p["branch3x3dbl_2"], padding=1)
    bd = jnp.concatenate([basic_conv2d(bd, p["branch3x3dbl_3a"], padding=(0, 1)),
                          basic_conv2d(bd, p["branch3x3dbl_3b"], padding=(1, 0))],
                         axis=-1)
    bp = avg_pool(x, 3, 1, pad=1)
    bp = basic_conv2d(bp, p["branch_pool"])
    return jnp.concatenate([b1, b3, bd, bp], axis=-1)


def inception_aux(x, p):
    x = avg_pool(x, 5, 3)
    x = basic_conv2d(x, p["conv0"])
    x = basic_conv2d(x, p["conv1"])
    x = jnp.mean(x.astype(jnp.float32), axis=(1, 2))   # adaptive_avg_pool2d((1,1))
    return linear(x, p["fc"])


def inception_v3_forward(params, x_nchw, dropout_key):
    x = jnp.transpose(x_nchw, (0, 2, 3, 1)).astype(jnp.bfloat16)   # NCHW -> NHWC bf16
    x = basic_conv2d(x, params["Conv2d_1a_3x3"], stride=2)
    x = basic_conv2d(x, params["Conv2d_2a_3x3"])
    x = basic_conv2d(x, params["Conv2d_2b_3x3"], padding=1)
    x = max_pool(x, 3, 2)
    x = basic_conv2d(x, params["Conv2d_3b_1x1"])
    x = basic_conv2d(x, params["Conv2d_4a_3x3"])
    x = max_pool(x, 3, 2)
    x = inception_a(x, params["Mixed_5b"])
    x = inception_a(x, params["Mixed_5c"])
    x = inception_a(x, params["Mixed_5d"])
    x = inception_b(x, params["Mixed_6a"])
    x = inception_c(x, params["Mixed_6b"])
    x = inception_c(x, params["Mixed_6c"])
    x = inception_c(x, params["Mixed_6d"])
    x = inception_c(x, params["Mixed_6e"])
    aux = inception_aux(x, params["AuxLogits"])        # training-mode aux head
    x = inception_d(x, params["Mixed_7a"])
    x = inception_e(x, params["Mixed_7b"])
    x = inception_e(x, params["Mixed_7c"])
    x = jnp.mean(x.astype(jnp.float32), axis=(1, 2))   # AdaptiveAvgPool2d + flatten
    # Dropout(p=0.5), training mode.
    # TODO(synk): PyTorch's dropout RNG stream cannot be bit-reproduced; a
    # deterministic JAX Bernoulli mask with the same keep-prob / scaling is used.
    keep = jax.random.bernoulli(dropout_key, 0.5, x.shape)
    x = jnp.where(keep, x / 0.5, 0.0)
    outputs = linear(x, params["fc"])
    return {"outputs": outputs, "aux_outputs": aux}


# ---------------------------------------------------------------------------
# Parameter init (PyTorch OIHW layout) + one-time prep into matmul layout
# ---------------------------------------------------------------------------
class _ParamGen:
    def __init__(self, seed):
        self._key = jax.random.PRNGKey(seed)

    def _next(self):
        self._key, k = jax.random.split(self._key)
        return k

    def conv(self, cin, cout, kh, kw=None, std=0.1):
        kw = kh if kw is None else kw
        return {
            "w": std * jax.random.normal(self._next(), (cout, cin, kh, kw),
                                         jnp.float32),
            "gamma": jnp.ones((cout,), jnp.float32),
            "beta": jnp.zeros((cout,), jnp.float32),
        }

    def linear(self, cin, cout, std=0.1):
        return {
            "w": std * jax.random.normal(self._next(), (cout, cin), jnp.float32),
            "b": jnp.zeros((cout,), jnp.float32),
        }


def _prep_conv(p):
    """Pre-transpose + pre-pad conv weight to (Kp, Np) bf16 matmul layout."""
    w = p["w"]                                  # OIHW
    cout, cin, kh, kw = w.shape
    K, N = kh * kw * cin, cout
    Kp, tk = _k_tiles(K)
    Np, tn = _n_tiles(N)
    wm = jnp.transpose(w, (2, 3, 1, 0)).reshape(K, N).astype(jnp.bfloat16)
    wm = jnp.pad(wm, ((0, Kp - K), (0, Np - N)))
    g = jnp.pad(p["gamma"].astype(jnp.float32).reshape(1, N), ((0, 0), (0, Np - N)))
    b = jnp.pad(p["beta"].astype(jnp.float32).reshape(1, N), ((0, 0), (0, Np - N)))
    return {"wm": wm, "gamma": g, "beta": b,
            "meta": (kh, kw, cin, N, K, Kp, Np, tk, tn)}


def prepare_params(tree):
    if isinstance(tree, dict):
        if "gamma" in tree and "w" in tree:     # BasicConv2d leaf
            return _prep_conv(tree)
        return {k: prepare_params(v) for k, v in tree.items()}
    return tree


def init_params(num_classes, seed=0):
    pg = _ParamGen(seed)

    def a_p(cin, pool_features):
        return {"branch1x1": pg.conv(cin, 64, 1),
                "branch5x5_1": pg.conv(cin, 48, 1),
                "branch5x5_2": pg.conv(48, 64, 5),
                "branch3x3dbl_1": pg.conv(cin, 64, 1),
                "branch3x3dbl_2": pg.conv(64, 96, 3),
                "branch3x3dbl_3": pg.conv(96, 96, 3),
                "branch_pool": pg.conv(cin, pool_features, 1)}

    def b_p(cin):
        return {"branch3x3": pg.conv(cin, 384, 3),
                "branch3x3dbl_1": pg.conv(cin, 64, 1),
                "branch3x3dbl_2": pg.conv(64, 96, 3),
                "branch3x3dbl_3": pg.conv(96, 96, 3)}

    def c_p(cin, c7):
        return {"branch1x1": pg.conv(cin, 192, 1),
                "branch7x7_1": pg.conv(cin, c7, 1),
                "branch7x7_2": pg.conv(c7, c7, 1, 7),
                "branch7x7_3": pg.conv(c7, 192, 7, 1),
                "branch7x7dbl_1": pg.conv(cin, c7, 1),
                "branch7x7dbl_2": pg.conv(c7, c7, 7, 1),
                "branch7x7dbl_3": pg.conv(c7, c7, 1, 7),
                "branch7x7dbl_4": pg.conv(c7, c7, 7, 1),
                "branch7x7dbl_5": pg.conv(c7, 192, 1, 7),
                "branch_pool": pg.conv(cin, 192, 1)}

    def d_p(cin):
        return {"branch3x3_1": pg.conv(cin, 192, 1),
                "branch3x3_2": pg.conv(192, 320, 3),
                "branch7x7x3_1": pg.conv(cin, 192, 1),
                "branch7x7x3_2": pg.conv(192, 192, 1, 7),
                "branch7x7x3_3": pg.conv(192, 192, 7, 1),
                "branch7x7x3_4": pg.conv(192, 192, 3)}

    def e_p(cin):
        return {"branch1x1": pg.conv(cin, 320, 1),
                "branch3x3_1": pg.conv(cin, 384, 1),
                "branch3x3_2a": pg.conv(384, 384, 1, 3),
                "branch3x3_2b": pg.conv(384, 384, 3, 1),
                "branch3x3dbl_1": pg.conv(cin, 448, 1),
                "branch3x3dbl_2": pg.conv(448, 384, 3),
                "branch3x3dbl_3a": pg.conv(384, 384, 1, 3),
                "branch3x3dbl_3b": pg.conv(384, 384, 3, 1),
                "branch_pool": pg.conv(cin, 192, 1)}

    return {
        "Conv2d_1a_3x3": pg.conv(3, 32, 3),
        "Conv2d_2a_3x3": pg.conv(32, 32, 3),
        "Conv2d_2b_3x3": pg.conv(32, 64, 3),
        "Conv2d_3b_1x1": pg.conv(64, 80, 1),
        "Conv2d_4a_3x3": pg.conv(80, 192, 3),
        "Mixed_5b": a_p(192, 32),
        "Mixed_5c": a_p(256, 64),
        "Mixed_5d": a_p(288, 64),
        "Mixed_6a": b_p(288),
        "Mixed_6b": c_p(768, 128),
        "Mixed_6c": c_p(768, 160),
        "Mixed_6d": c_p(768, 160),
        "Mixed_6e": c_p(768, 192),
        "AuxLogits": {"conv0": pg.conv(768, 128, 1),
                      "conv1": pg.conv(128, 768, 5, std=0.01),
                      "fc": pg.linear(768, num_classes, std=0.001)},
        "Mixed_7a": d_p(768),
        "Mixed_7b": e_p(1280),
        "Mixed_7c": e_p(2048),
        "fc": pg.linear(2048, num_classes),
    }


if __name__ == "__main__":
    num_classes = 10
    batch = 2
    key = jax.random.PRNGKey(0)
    kx, kdrop = jax.random.split(key)
    # Smallest legal input for the aux-head path: (batch, 3, 299, 299), NCHW.
    x = jax.random.normal(kx, (batch, 3, 299, 299), jnp.float32)

    params = prepare_params(init_params(num_classes, seed=0))
    out = inception_v3_forward(params, x, kdrop)
    out = jax.block_until_ready(out)

    assert out["outputs"].shape == (batch, num_classes)
    assert out["aux_outputs"].shape == (batch, num_classes)
    assert bool(jnp.all(jnp.isfinite(out["outputs"])))
    assert bool(jnp.all(jnp.isfinite(out["aux_outputs"])))
    print("KERNEL_OK")
</pallas_src>

<mosaic_0001>
module attributes {stable_mosaic.version = 11 : i64} {
  func.func @_conv_mm_kernel(%arg0: i32, %arg1: i32, %arg2: i32, %arg3: memref<256x128xbf16, #tpu.memory_space<vmem>>, %arg4: memref<128x128xbf16, #tpu.memory_space<vmem>>, %arg5: memref<256x128xbf16, #tpu.memory_space<vmem>>, %arg6: memref<256x128xf32, #tpu.memory_space<vmem>>) attributes {dimension_semantics = [#tpu.dimension_semantics<parallel>, #tpu.dimension_semantics<parallel>, #tpu.dimension_semantics<arbitrary>], iteration_bounds = array<i64: 174, 1, 1>, scalar_prefetch = 0 : i64, scratch_operands = 1 : i64, tpu.core_type = #tpu.core_type<tc>, window_params = [{transform_indices = @transform_0, window_bounds = array<i64: 256, 128>}, {transform_indices = @transform_1, window_bounds = array<i64: 128, 128>}, {transform_indices = @transform_2, window_bounds = array<i64: 256, 128>}]} {
    %c0_i32 = arith.constant 0 : i32
    %0 = arith.cmpi eq, %arg2, %c0_i32 : i32
    %1 = arith.extui %0 : i1 to i32
    %c0_i32_0 = arith.constant 0 : i32
    %2 = arith.cmpi ne, %1, %c0_i32_0 : i32
    scf.if %2 {
      %cst_10 = arith.constant 0.000000e+00 : f32
      %12 = vector.broadcast %cst_10 : f32 to vector<256x128xf32>
      %c0_11 = arith.constant 0 : index
      %c0_12 = arith.constant 0 : index
      %13 = vector.load %arg6[%c0_11, %c0_12] : memref<256x128xf32, #tpu.memory_space<vmem>>, vector<256x128xf32>
      tpu.vector_store %arg6[%c0_11, %c0_12], %12 {strides = array<i32>} : memref<256x128xf32, #tpu.memory_space<vmem>>, vector<256x128xf32>,
    } else {
    }
    %c0 = arith.constant 0 : index
    %c0_1 = arith.constant 0 : index
    %3 = vector.load %arg6[%c0, %c0_1] : memref<256x128xf32, #tpu.memory_space<vmem>>, vector<256x128xf32>
    %c0_2 = arith.constant 0 : index
    %c0_3 = arith.constant 0 : index
    %4 = vector.load %arg3[%c0_2, %c0_3] : memref<256x128xbf16, #tpu.memory_space<vmem>>, vector<256x128xbf16>
    %c0_4 = arith.constant 0 : index
    %c0_5 = arith.constant 0 : index
    %5 = vector.load %arg4[%c0_4, %c0_5] : memref<128x128xbf16, #tpu.memory_space<vmem>>, vector<128x128xbf16>
    %cst = arith.constant dense<0.000000e+00> : vector<256x128xf32>
    %6 = tpu.matmul %4, %5, %cst {dimension_numbers = #tpu.dot_dimension_numbers<[1], [0], [0], [1], [0, 0, 1, 1], [], []>} : vector<256x128xbf16>, vector<128x128xbf16>, vector<256x128xf32> -> vector<256x128xf32>
    %7 = arith.addf %3, %6 : vector<256x128xf32>
    %c0_6 = arith.constant 0 : index
    %c0_7 = arith.constant 0 : index
    %8 = vector.load %arg6[%c0_6, %c0_7] : memref<256x128xf32, #tpu.memory_space<vmem>>, vector<256x128xf32>
    tpu.vector_store %arg6[%c0_6, %c0_7], %7 {strides = array<i32>} : memref<256x128xf32, #tpu.memory_space<vmem>>, vector<256x128xf32>,
    %c0_i32_8 = arith.constant 0 : i32
    %9 = arith.cmpi eq, %arg2, %c0_i32_8 : i32
    %10 = arith.extui %9 : i1 to i32
    %c0_i32_9 = arith.constant 0 : i32
    %11 = arith.cmpi ne, %10, %c0_i32_9 : i32
    scf.if %11 {
      %c0_10 = arith.constant 0 : index
      %c0_11 = arith.constant 0 : index
      %12 = vector.load %arg6[%c0_10, %c0_11] : memref<256x128xf32, #tpu.memory_space<vmem>>, vector<256x128xf32>
      %13 = arith.truncf %12 : vector<256x128xf32> to vector<256x128xbf16>
      %c0_12 = arith.constant 0 : index
      %c0_13 = arith.constant 0 : index
      %14 = vector.load %arg5[%c0_12, %c0_13] : memref<256x128xbf16, #tpu.memory_space<vmem>>, vector<256x128xbf16>
      tpu.vector_store %arg5[%c0_12, %c0_13], %13 {strides = array<i32>} : memref<256x128xbf16, #tpu.memory_space<vmem>>, vector<256x128xbf16>,
    } else {
    }
    return
  }
  func.func @transform_0(%arg0: i32, %arg1: i32, %arg2: i32) -> (i32, i32) {
    %c0_i32 = arith.constant 0 : i32
    return %arg0, %arg2 : i32, i32
  }
  func.func @transform_1(%arg0: i32, %arg1: i32, %arg2: i32) -> (i32, i32) {
    %c0_i32 = arith.constant 0 : i32
    return %arg2, %arg1 : i32, i32
  }
  func.func @transform_2(%arg0: i32, %arg1: i32, %arg2: i32) -> (i32, i32) {
    %c0_i32 = arith.constant 0 : i32
    return %arg0, %arg1 : i32, i32
  }
}

</mosaic_0001>

<bundles_post_ra>
// kernel: tpu_custom_call.1
= control target key start
LH: loop header
LB: loop body
LE: loop exit
PB: predicated region body
PF: predicated region fallthrough
CT: control target
= control target key end

     0   :  { %7 = vsyncpa [#allocation4], 0  ;;  %s1792_s0 = inlined_call_operand.hbm [shape: bf16[44544,128], index: 0, kind: input, shape index: {}]   ;;  %s1793_s1 = inlined_call_operand.hbm [shape: bf16[128,128], index: 1, kind: input, shape index: {}]   ;;  %s1794_s2 = inlined_call_operand.hbm [shape: bf16[44544,128], index: 2, kind: output, shape index: {}]  }
   0x1   :  { %9 = vsyncpa [#allocation4 + $0x1], 0 }
   0x2   :  { %10 = vsyncpa [#allocation7], 0 }
   0x3   :  { %11 = vsyncpa [#allocation5], 0 }
   0x4   :  { %13 = vsyncpa [#allocation5 + $0x1], 0  ;;  %s1566_s9 = smov 0   ;;  %s1568_s10 = smov 0  }
   0x5   :  { %s1570_s11 = smov 0   ;;  %s1572_s12 = smov 0  }
   0x6   :  { %s1574_s13 = smov 0   ;;  %s1576_s14 = smov 0  }
   0x7 LB: > { %s1013_s15 = sadd.s32 4294967295, %s1542_s14   ;;  %s1014_s16 = sadd.s32 4294967294, %s1542_s14   ;;  %s1542_s14 = sphi %s1576_s14, %s19_s14   ;;  %s1538_s13 = sphi %s1574_s13, %s1813_s13   ;;  %s1534_s12 = sphi %s1572_s12, %s1812_s12   ;;  %s1530_s11 = sphi %s1570_s11, %s1811_s11   ;;  %s1526_s10 = sphi %s1568_s10, %s1810_s10   ;;  %s1522_s9 = sphi %s1566_s9, %s1809_s9  }
   0x8   : > { %p60_p0 = scmp.ne.s32.totalorder %s1526_s10, %s1522_s9  ;;  %p1600_p1 = scmp.eq.s32.totalorder %s1013_s15, 0 }
   0x9   : > { %p1604_p2 = scmp.eq.s32.totalorder %s1013_s15, 173  ;;  %p120_p3 = scmp.eq.s32.totalorder %s1014_s16, 173 }
   0xa   : > { %p1610_p4 = por %p1600_p1, %p60_p0  ;;  %p1015_p5 = scmp.ge.s32.totalorder %s1542_s14, 1 }
   0xb   : > { %p1615_p6 = por %p120_p3, %p60_p0  ;;  %p127_p7 = scmp.lt.s32.totalorder %s1542_s14, 175 }
   0xc   : > { %s1544_s22 = smov [#allocation6]   ;;  %s38_s25 = sadd.s32 1, %s1538_s13 }
   0xd   : > { %s1800_s20 = scalar_select %p1615_p6, 1, 0 }
   0xe   : > { %p1620_p8 = pnand %p1015_p5, %p127_p7  ;;  %s143_s23 = sshll.u32 %s1544_s22, 4  ;;  %s144_s23 = int_to_ptr.vmem [resolvable:$true] %s143_s23 }
   0xf   : > { %s1415_s26 = scalar_lea.vmem %s144_s23, 1024  ;;  %p1423_p3 = scmp.lt.s32.totalorder %s144_s23, %s144_s23 }
  0x10   : > { %p1311_p9 = pneg %p1620_p8  ;;  %p1416_p12 = scmp.ne.s32.totalorder %s144_s23, %s1415_s26 }
  0x11   : > { %p1424_p5 = scmp.lt.s32.totalorder %s1415_s26, %s1415_s26 }
  0x12   : > { %p1628_p10 = pnand %p1311_p9, %p1600_p1 }
  0x13   : > { %p1425_p7 = por %p1424_p5, %p1423_p3 }
  0x14   : > { %p1406_p11 = pneg %p1628_p10 }
  0x16   : > { %p1418_p13 = pnand %p1416_p12, %p1406_p11 }
  0x18   : > { %p1419_p0 = pneg %p1418_p13 }
  0x1a   : > { %p1426_p6 = pnand %p1425_p7, %p1419_p0 }
  0x1c   : > { %1429 = shalt.err (!%p1426_p6)
}
  0x1d   : > { %s1795_s27 = smov 64   ;;  %s1546_s28 = smov 4  }
  0x1e   : > { %1314 = dma.hbm_to_vmem [thread:$0]  (!%p1628_p10), %s1793_s1, 1024, %s144_s23, [#allocation7], %s1795_s27, %s1795_s27, %s1546_s28  }
  0x1f   : > { %p40_p6 = scmp.ge.s32.totalorder %s38_s25, 174  ;;  %s47_s3 = sadd.s32 1, %s1530_s11 }
  0x20   : > { %p54_p9 = scmp.ne.s32.totalorder %s1530_s11, %s1526_s10  ;;  %p55_p11 = scmp.eq.s32.totalorder %s1542_s14, 0 }
  0x21   : > { %s1815_s25 = smov (%p40_p6, %s38_s25), 0  ;;  %p1324_p0 = scmp.lt.s32.totalorder %s1542_s14, 174 }
  0x22   : > { %p1649_p12 = por %p55_p11, %p54_p9  ;;  %p1655_p13 = por %p1604_p2, %p54_p9 }
  0x23   : > { %s42_s6 = ssub.s32 %s1538_s13, %s1815_s25  ;;  %s157_s7 = sand.u32 1, %s1530_s11  }
  0x24   : > { %s1804_s5 = scalar_select %p1655_p13, 1, 0 }
  0x25   : > { %p45_p10 = scmp.eq.s32.totalorder %s42_s6, 0  ;;  %s1018_s8 = sshll.u32 %s157_s7, 7 }
  0x26   : > { %s1086_s16 = sshll.u32 %s1538_s13, 11  ;;  %s161_s26 = scalar_lea.vmem [#allocation3], %s1018_s8 }
  0x27   : > { %s1664_s15 = scalar_select %p45_p10, %s1530_s11, %s47_s3  }
  0x28   : > { %s168_s24 = scalar_lea.hbm %s1792_s0, %s1086_s16  ;;  %s169_s29 = sshll.u32 %s161_s26, 4  ;;  %s170_s29 = int_to_ptr.vmem [resolvable:$true] %s169_s29 }
  0x29   : > { %p1672_p2 = pnand %p1324_p0, %p1649_p12  ;;  %s158_s30 = scalar_lea.sflag [#allocation4], %s157_s7 }
  0x2a   : > { %s1443_s6 = scalar_lea.vmem %s170_s29, 2048  ;;  %s1547_s3 = smov [#allocation3]  }
  0x2b   : > { %p1432_p3 = pneg %p1672_p2  ;;  %p1444_p5 = scmp.ne.s32.totalorder %s170_s29, %s1443_s6 }
  0x2c   : > { %s1448_s27 = sshll.u32 %s1547_s3, 4  ;;  %s1449_s27 = int_to_ptr.vmem [resolvable:$false] %s1448_s27 }
  0x2d   : > { %p1446_p7 = pnand %p1444_p5, %p1432_p3  ;;  %s1450_s16 = scalar_lea.vmem %s1449_s27, 4096 }
  0x2e   : > { %p1451_p9 = scmp.lt.s32.totalorder %s170_s29, %s1449_s27  ;;  %p1452_p11 = scmp.lt.s32.totalorder %s1450_s16, %s1443_s6 }
  0x2f   : > { %p1447_p6 = pneg %p1446_p7 }
  0x30   : > { %p1453_p10 = por %p1452_p11, %p1451_p9 }
  0x32   : > { %p1454_p13 = pnand %p1453_p10, %p1447_p6 }
  0x34   : > { %1457 = shalt.err (!%p1454_p13)
}
  0x35   : > { %s1806_s4 = smov 64   ;;  %181 = sbr.rel (%p1620_p8) target bundleno = 333 (0x14d), region = 28 }
  0x36   : > { %1318 = dma.hbm_to_vmem [thread:$0]  (!%p1672_p2), %s168_s24, 2048, %s170_s29, %s158_s30, %s1806_s4, %s1806_s4, %s1546_s28  }
  0x37   : > { %s1686_s7 = sand.u32 (!%p1620_p8), 1, %s1526_s10  }
  0x38   : > { %s1022_s27 = sshll.u32 (!%p1620_p8), %s1686_s7, 7  ;;  %s184_s8 = scalar_lea.sflag (!%p1620_p8), [#allocation4], %s1686_s7 }
  0x39   : > { %s1692_s22 = scalar_lea.vmem (!%p1620_p8), [#allocation3], %s1022_s27 }
  0x3a   : > { %1509 = dma.done.wait (%p1610_p4), %s184_s8, 2048  }
  0x3b   : > { %1511 = vsyncadd (%p1610_p4), %s184_s8, 4294965248 }
  0x3c   : > { %1513 = dma.done.wait (%p1600_p1), [#allocation7], 1024  }
  0x3d   : > { %1515 = vsyncadd (%p1600_p1), [#allocation7], 4294966272  ;;  %v1380_v0 = vld [vmem:[#allocation6 + $0x38] sm:$0xff]   ;;  %v1381_v1 = vld [vmem:[#allocation6 + $0x30] sm:$0xff]   ;;  %s1720_s17 = scalar_lea.vmem [#allocation8], %s1022_s27  ;;  %s1119_s19 = sshll.u32 %s1534_s12, 11 }
  0x3e   : > { %1239 = vmatprep.subr.bf16.mxu0 %v1380_v0  ;;  %1287 = vmatprep.subr.bf16.mxu1 %v1380_v0  ;;  %v1382_v2 = vld [vmem:[#allocation6 + $0x28] sm:$0xff]   ;;  %v1383_v3 = vld [vmem:[#allocation6 + $0x20] sm:$0xff]   ;;  %v1384_v6 = vld [vmem:[#allocation6 + $0x18] sm:$0xff]   ;;  %s911_s21 = sshll.u32 %s1720_s17, 4  ;;  %s1739_s24 = scalar_lea.hbm %s1794_s2, %s1119_s19  ;;  %s1741_s21 = int_to_ptr.vmem [resolvable:$true] %s911_s21 }
  0x3f   : > { %1240 = vmatpush3.bf16.msra.mxu0 %v1380_v0  ;;  %1295 = vmatpush3.bf16.msra.mxu1 %v1380_v0  ;;  %v1388_v4 = vld [vmem:[%s1692_s22] sm:$0xff]   ;;  %v1385_v7 = vld [vmem:[#allocation6 + $0x10] sm:$0xff]   ;;  %v1386_v8 = vld [vmem:[#allocation6 + $0x8] sm:$0xff]   ;;  %s897_s12 = scalar_lea.sflag [#allocation5], %s1686_s7  ;;  %s1458_s26 = scalar_lea.vmem %s1741_s21, 2048 }
  0x40   : > { %1241 = vmatprep.subr.bf16.mxu0 %v1381_v1  ;;  %1288 = vmatprep.subr.bf16.mxu1 %v1381_v1  ;;  %v1389_v5 = vld [vmem:[%s1692_s22 + $0x40] sm:$0xff]   ;;  %v1390_v10 = vld [vmem:[%s1692_s22 + $0x8] sm:$0xff]   ;;  %v1392_v12 = vld [vmem:[%s1692_s22 + $0x10] sm:$0xff]   ;;  %p1459_p1 = scmp.ne.s32.totalorder %s1741_s21, %s1458_s26  ;;  %p1807_p4 = scmp.ne.s32.totalorder %s1804_s5, 0 }
  0x41   : > { %1255 = vmatprep.mubr.bf16.mxu0 %v1388_v4  ;;  %1271 = vmatprep.mubr.bf16.mxu1 %v1389_v5  ;;  %v1387_v9 = vld [vmem:[#allocation6] sm:$0xff]   ;;  %v1391_v11 = vld [vmem:[%s1692_s22 + $0x48] sm:$0xff]   ;;  %v1393_v13 = vld [vmem:[%s1692_s22 + $0x50] sm:$0xff]   ;;  %s1548_s29 = smov [#allocation8]  }
  0x42   : > { %v1394_v14 = vld [vmem:[%s1692_s22 + $0x18] sm:$0xff]   ;;  %v1396_v16 = vld [vmem:[%s1692_s22 + $0x20] sm:$0xff]   ;;  %v1398_v18 = vld [vmem:[%s1692_s22 + $0x28] sm:$0xff]   ;;  %p1460_p8 = pnand %p1459_p1, %p1807_p4  ;;  %s1462_s18 = sshll.u32 %s1548_s29, 4  ;;  %s1463_s18 = int_to_ptr.vmem [resolvable:$false] %s1462_s18 }
  0x43   : > { %1242 = vmatpush3.bf16.msra.mxu0 %v1381_v1  ;;  %1296 = vmatpush3.bf16.msra.mxu1 %v1381_v1  ;;  %v1395_v15 = vld [vmem:[%s1692_s22 + $0x58] sm:$0xff]   ;;  %v1397_v17 = vld [vmem:[%s1692_s22 + $0x60] sm:$0xff]   ;;  %v1399_v19 = vld [vmem:[%s1692_s22 + $0x68] sm:$0xff]   ;;  %s1464_s30 = scalar_lea.vmem %s1463_s18, 4096  ;;  %p1465_p13 = scmp.lt.s32.totalorder %s1741_s21, %s1463_s18 }
  0x44   : > { %1243 = vmatprep.subr.bf16.mxu0 %v1382_v2  ;;  %1289 = vmatprep.subr.bf16.mxu1 %v1382_v2  ;;  %v1400_v20 = vld [vmem:[%s1692_s22 + $0x30] sm:$0xff]   ;;  %v1402_v22 = vld [vmem:[%s1692_s22 + $0x38] sm:$0xff]   ;;  %p1461_p12 = pneg %p1460_p8  ;;  %p1466_p0 = scmp.lt.s32.totalorder %s1464_s30, %s1458_s26 }
  0x45   : > { %v1401_v21 = vld [vmem:[%s1692_s22 + $0x70] sm:$0xff]   ;;  %v1403_v23 = vld [vmem:[%s1692_s22 + $0x78] sm:$0xff]  }
  0x46   : > { %p1467_p2 = por %p1466_p0, %p1465_p13 }
  0x47   : > { %1244 = vmatpush3.bf16.msra.mxu0 %v1382_v2  ;;  %1297 = vmatpush3.bf16.msra.mxu1 %v1382_v2 }
  0x48   : > { %1245 = vmatprep.subr.bf16.mxu0 %v1383_v3  ;;  %1290 = vmatprep.subr.bf16.mxu1 %v1383_v3  ;;  %p1468_p3 = pnand %p1467_p2, %p1461_p12 }
  0x4b   : > { %1246 = vmatpush3.bf16.msra.mxu0 %v1383_v3  ;;  %1298 = vmatpush3.bf16.msra.mxu1 %v1383_v3 }
  0x4c   : > { %1247 = vmatprep.subr.bf16.mxu0 %v1384_v6  ;;  %1291 = vmatprep.subr.bf16.mxu1 %v1384_v6 }
  0x4f   : > { %1248 = vmatpush3.bf16.msra.mxu0 %v1384_v6  ;;  %1299 = vmatpush3.bf16.msra.mxu1 %v1384_v6 }
  0x50   : > { %1249 = vmatprep.subr.bf16.mxu0 %v1385_v7  ;;  %1292 = vmatprep.subr.bf16.mxu1 %v1385_v7 }
  0x53   : > { %1250 = vmatpush3.bf16.msra.mxu0 %v1385_v7  ;;  %1300 = vmatpush3.bf16.msra.mxu1 %v1385_v7 }
  0x54   : > { %1251 = vmatprep.subr.bf16.mxu0 %v1386_v8  ;;  %1293 = vmatprep.subr.bf16.mxu1 %v1386_v8 }
  0x57   : > { %1252 = vmatpush3.bf16.msra.mxu0 %v1386_v8  ;;  %1301 = vmatpush3.bf16.msra.mxu1 %v1386_v8 }
  0x58   : > { %1253 = vmatprep.subr.bf16.mxu0 %v1387_v9  ;;  %1294 = vmatprep.subr.bf16.mxu1 %v1387_v9 }
  0x5b   : > { %1254 = vmatpush3.bf16.msra.mxu0 %v1387_v9  ;;  %1302 = vmatpush3.bf16.msra.mxu1 %v1387_v9 }
  0x5e   : > { %1256 = vmatmul.mubr.bf16.vlgmr.msra.gmra.mxu0 %v1390_v10  ;;  %1272 = vmatmul.mubr.bf16.vlgmr.msra.gmra.mxu1 %v1391_v11 }
  0x5f   : > { %1259 = vmatprep.mubr.bf16.mxu0 %v1392_v12  ;;  %1275 = vmatprep.mubr.bf16.mxu1 %v1393_v13 }
  0x66   : > { %1260 = vmatmul.mubr.bf16.gmra.mxu0 %v1394_v14  ;;  %1276 = vmatmul.mubr.bf16.gmra.mxu1 %v1395_v15 }
  0x67   : > { %1263 = vmatprep.mubr.bf16.mxu0 %v1396_v16  ;;  %1279 = vmatprep.mubr.bf16.mxu1 %v1397_v17 }
  0x6e   : > { %1264 = vmatmul.mubr.bf16.gmra.mxu0 %v1398_v18  ;;  %1280 = vmatmul.mubr.bf16.gmra.mxu1 %v1399_v19 }
  0x6f   : > { %1267 = vmatprep.mubr.bf16.mxu0 %v1400_v20  ;;  %1283 = vmatprep.mubr.bf16.mxu1 %v1401_v21 }
  0x76   : > { %1268 = vmatmul.mubr.bf16.gmra.mxu0 %v1402_v22  ;;  %1284 = vmatmul.mubr.bf16.gmra.mxu1 %v1403_v23 }
 0x11e   : > { %v1257_v24 = vpop.f32.mrf.mxu0  ;;  %v1273_v25 = vpop.f32.mrf.mxu1 }
 0x120   : > { %v510_v26 = vpop.f32.mrf.mxu0  ;;  %v574_v27 = vpop.f32.mrf.mxu1 }
 0x122   : > { %v1258_v28 = vpop.f32.mrf.mxu0  ;;  %v1274_v29 = vpop.f32.mrf.mxu1 }
 0x123   : > { %v1128_v30 = vpack.c.bf16 %v1258_v28, %v1257_v24  ;;  %v1168_v31 = vpack.c.bf16 %v1274_v29, %v1273_v25 }
 0x124   : > { %v513_v32 = vpop.f32.mrf.mxu0  ;;  %v577_v33 = vpop.f32.mrf.mxu1 }
 0x125   : > { %1200 = vst [vmem:[%s1720_s17 + $0x8] sm:$0xff] %v1128_v30   ;;  %1208 = vst [vmem:[%s1720_s17 + $0x48] sm:$0xff] %v1168_v31   ;;  %v1123_v34 = vpack.c.bf16 %v513_v32, %v510_v26  ;;  %v1163_v35 = vpack.c.bf16 %v577_v33, %v574_v27 }
 0x126   : > { %v1261_v36 = vpop.f32.mrf.mxu0  ;;  %v1277_v37 = vpop.f32.mrf.mxu1 }
 0x127   : > { %1124 = vst [vmem:[%s1720_s17] sm:$0xff] %v1123_v34   ;;  %1207 = vst [vmem:[%s1720_s17 + $0x40] sm:$0xff] %v1163_v35  }
 0x128   : > { %v526_v38 = vpop.f32.mrf.mxu0  ;;  %v590_v39 = vpop.f32.mrf.mxu1 }
 0x12a   : > { %v1262_v40 = vpop.f32.mrf.mxu0  ;;  %v1278_v41 = vpop.f32.mrf.mxu1 }
 0x12b   : > { %v1138_v42 = vpack.c.bf16 %v1262_v40, %v1261_v36  ;;  %v1178_v43 = vpack.c.bf16 %v1278_v41, %v1277_v37 }
 0x12c   : > { %v529_v44 = vpop.f32.mrf.mxu0  ;;  %v593_v45 = vpop.f32.mrf.mxu1 }
 0x12d   : > { %1202 = vst [vmem:[%s1720_s17 + $0x18] sm:$0xff] %v1138_v42   ;;  %1210 = vst [vmem:[%s1720_s17 + $0x58] sm:$0xff] %v1178_v43   ;;  %v1133_v46 = vpack.c.bf16 %v529_v44, %v526_v38  ;;  %v1173_v47 = vpack.c.bf16 %v593_v45, %v590_v39 }
 0x12e   : > { %v1265_v48 = vpop.f32.mrf.mxu0  ;;  %v1281_v49 = vpop.f32.mrf.mxu1 }
 0x12f   : > { %1201 = vst [vmem:[%s1720_s17 + $0x10] sm:$0xff] %v1133_v46   ;;  %1209 = vst [vmem:[%s1720_s17 + $0x50] sm:$0xff] %v1173_v47  }
 0x130   : > { %v542_v50 = vpop.f32.mrf.mxu0  ;;  %v606_v51 = vpop.f32.mrf.mxu1 }
 0x132   : > { %v1266_v52 = vpop.f32.mrf.mxu0  ;;  %v1282_v53 = vpop.f32.mrf.mxu1 }
 0x133   : > { %v1148_v54 = vpack.c.bf16 %v1266_v52, %v1265_v48  ;;  %v1188_v55 = vpack.c.bf16 %v1282_v53, %v1281_v49 }
 0x134   : > { %v545_v56 = vpop.f32.mrf.mxu0  ;;  %v609_v57 = vpop.f32.mrf.mxu1 }
 0x135   : > { %1204 = vst [vmem:[%s1720_s17 + $0x28] sm:$0xff] %v1148_v54   ;;  %1212 = vst [vmem:[%s1720_s17 + $0x68] sm:$0xff] %v1188_v55   ;;  %v1143_v58 = vpack.c.bf16 %v545_v56, %v542_v50  ;;  %v1183_v59 = vpack.c.bf16 %v609_v57, %v606_v51 }
 0x136   : > { %v1269_v60 = vpop.f32.mrf.mxu0  ;;  %v1285_v61 = vpop.f32.mrf.mxu1 }
 0x137   : > { %1203 = vst [vmem:[%s1720_s17 + $0x20] sm:$0xff] %v1143_v58   ;;  %1211 = vst [vmem:[%s1720_s17 + $0x60] sm:$0xff] %v1183_v59  }
 0x138   : > { %v558_v62 = vpop.f32.mrf.mxu0  ;;  %v622_v63 = vpop.f32.mrf.mxu1 }
 0x13a   : > { %v1270_v0 = vpop.f32.mrf.mxu0  ;;  %v1286_v1 = vpop.f32.mrf.mxu1 }
 0x13b   : > { %v1158_v2 = vpack.c.bf16 %v1270_v0, %v1269_v60  ;;  %v1198_v3 = vpack.c.bf16 %v1286_v1, %v1285_v61 }
 0x13c   : > { %v561_v4 = vpop.f32.mrf.mxu0  ;;  %v625_v5 = vpop.f32.mrf.mxu1 }
 0x13d   : > { %1206 = vst [vmem:[%s1720_s17 + $0x38] sm:$0xff] %v1158_v2   ;;  %1214 = vst [vmem:[%s1720_s17 + $0x78] sm:$0xff] %v1198_v3   ;;  %v1153_v6 = vpack.c.bf16 %v561_v4, %v558_v62  ;;  %v1193_v7 = vpack.c.bf16 %v625_v5, %v622_v63 }
 0x13f   : > { %1205 = vst [vmem:[%s1720_s17 + $0x30] sm:$0xff] %v1153_v6   ;;  %1213 = vst [vmem:[%s1720_s17 + $0x70] sm:$0xff] %v1193_v7  }
 0x140   : > { %1471 = shalt.err (!%p1468_p3)
}
 0x141   : > { %s1472_s6 = scalar_lea.hbm %s1739_s24, 2048  ;;  %s1476_s4 = scalar_lea.hbm %s1794_s2, 356352 }
 0x142   : > { %p1473_p5 = scmp.ne.s32.totalorder %s1739_s24, %s1472_s6  ;;  %p1477_p9 = scmp.lt.s32.totalorder %s1739_s24, %s1794_s2 }
 0x143   : > { %p1478_p11 = scmp.lt.s32.totalorder %s1476_s4, %s1472_s6 }
 0x144   : > { %p1474_p7 = pnand %p1473_p5, %p1807_p4 }
 0x145   : > { %p1479_p10 = por %p1478_p11, %p1477_p9 }
 0x146   : > { %p1475_p6 = pneg %p1474_p7 }
 0x148   : > { %p1480_p1 = pnand %p1479_p10, %p1475_p6 }
 0x14a   : > { %1483 = shalt.err (!%p1480_p1)
}
 0x14b   : > { %s1549_s22 = smov 64   ;;  %s1550_s17 = smov 4  }
 0x14c   : > { %1309 = dma.vmem_to_hbm [thread:$0]  (%p1807_p4), %s1741_s21, 2048, %s1739_s24, %s897_s12, %s1549_s22, %s1549_s22, %s1550_s17  }
 0x14d PF: > { %p1326_p8 = scmp.ge.s32.totalorder %s1542_s14, 2  ;;  %s926_s19 = sand.u32 1, %s1522_s9  }
 0x14e   : > { %p1808_p12 = scmp.ne.s32.totalorder %s1800_s20, 0  ;;  %s927_s28 = scalar_lea.sflag [#allocation5], %s926_s19 }
 0x150   : > { %p1320_p13 = pnand %p1326_p8, %p1808_p12 }
 0x152   : > { %p1321_p0 = pneg %p1320_p13 }
 0x154   : > { %1517 = dma.done.wait (%p1321_p0), %s927_s28, 2048  }
 0x155   : > { %1519 = vsyncadd (%p1321_p0), %s927_s28, 4294965248  ;;  %s19_s14 = sadd.s32 1, %s1542_s14   ;;  %s1809_s9 = smov %s1526_s10 }
 0x156   : > { %p16_p2 = scmp.ge.s32.totalorder %s19_s14, 176   ;;  %s1810_s10 = smov %s1530_s11 }
 0x157   : > { %s1811_s11 = smov %s1664_s15  ;;  %s1812_s12 = smov %s1538_s13 }
 0x158   : > { %s1813_s13 = smov %s1815_s25  ;;  %18 = sbr.rel (!%p16_p2) target bundleno = 7 (0x7), region = 86 }
 0x15d   :  { %932 = vsyncpa [#allocation4], 1 }
 0x15e   :  { %934 = vsyncpa [#allocation4 + $0x1], 1 }
 0x15f   :  { %935 = vsyncpa [#allocation7], 1 }
 0x160   :  { %936 = vsyncpa [#allocation5], 1 }
 0x161   :  { %938 = vsyncpa [#allocation5 + $0x1], 1 }

</bundles_post_ra>
